<compile_context>
chip_gen: v7x
topology: tpu7x:2x2x1
jax: 0.10.0
libtpu: 0.0.40
codegen_flags: <defaults>
</compile_context>

<pallas_src>
import functools
import math

import jax
import jax.numpy as jnp
from jax.experimental import pallas as pl
from jax.experimental.pallas import tpu as pltpu

EPS = 1e-4   # BatchNorm eps from the module definition
LANE = 128   # TPU lane width


# ----------------------------- small helpers --------------------------------

def _round_up(x, m):
    return (x + m - 1) // m * m


def _elu(x):
    # ELU(alpha=1): x if x > 0 else exp(x) - 1 (clamp so exp never overflows)
    return jnp.where(x > 0, x, jnp.exp(jnp.minimum(x, 0.0)) - 1.0)


def _circ_shift(x, s):
    """result[t] = x[(t + s) % n] along axis 0 (static shift s)."""
    n = x.shape[0]
    s = s % n
    if s == 0:
        return x
    return jnp.concatenate([x[s:], x[:s]], axis=0)


def _repack_weight(w, cin_p, cout_p):
    """PyTorch Conv1d weight (C_out, C_in, K) -> per-tap (K, Cin_p, Cout_p)."""
    c_out, c_in, _ = w.shape
    wt = jnp.transpose(w.astype(jnp.float32), (2, 1, 0))      # (K, C_in, C_out)
    return jnp.pad(wt, ((0, 0), (0, cin_p - c_in), (0, cout_p - c_out)))


def _pad_vec(v, cp):
    return jnp.pad(v.astype(jnp.float32), (0, cp - v.shape[0]))[None, :]


def _vmem_limit(required_bytes):
    # generous slack; clamp so it stays inside v7x's 64 MiB physical VMEM
    return int(min(48 * 2**20, max(32 * 2**20, 4 * required_bytes)))


# ------------------------------ Pallas kernels -------------------------------

def _stage1_kernel(x_ref, w1_ref, b1_ref, w3_ref, b3_ref,
                   y1_ref, skip_ref, stats1_ref, *, cin_p, k):
    """Per-sample: stride-2 circular conv1 and conv3(skip) + BN1 stat accumulation."""
    pad = k // 2
    x = x_ref[0]                        # (Lo, 2*Cin_p) = [x[2t] | x[2t+1]] in lanes
    x_even = x[:, :cin_p]               # x[2t]
    x_odd = x[:, cin_p:]                # x[2t+1]

    lo = x.shape[0]
    y1 = jnp.zeros((lo, w1_ref.shape[2]), jnp.float32)
    skip = jnp.zeros((lo, w3_ref.shape[2]), jnp.float32)
    for j in range(k):                  # tap offset d = j - pad; x[2t + d]
        m, r = divmod(j - pad, 2)
        tap = _circ_shift(x_odd if r else x_even, m)
        y1 = y1 + jnp.dot(tap, w1_ref[j], preferred_element_type=jnp.float32)
        skip = skip + jnp.dot(tap, w3_ref[j], preferred_element_type=jnp.float32)
    y1 = y1 + b1_ref[...]
    skip = skip + b3_ref[...]

    y1_ref[0] = y1
    skip_ref[0] = skip

    @pl.when(pl.program_id(0) == 0)
    def _init():
        stats1_ref[...] = jnp.zeros_like(stats1_ref)

    stats1_ref[...] += jnp.concatenate(
        [jnp.sum(y1, axis=0, keepdims=True),
         jnp.sum(y1 * y1, axis=0, keepdims=True)], axis=0)


def _stage2_kernel(y1_ref, skip_ref, stats1_ref, g1_ref, be1_ref, w2_ref, b2_ref,
                   z_ref, stats2_ref, *, n_rows, k):
    """Per-sample: BN1 normalize + ELU + stride-1 circular conv2 + residual add
    + BN2 stat accumulation. `h` never leaves VMEM."""
    pad = k // 2
    inv_n = 1.0 / n_rows
    st = stats1_ref[...]
    mean1 = st[0:1, :] * inv_n
    var1 = st[1:2, :] * inv_n - mean1 * mean1

    y1 = y1_ref[0]
    h = _elu((y1 - mean1) * jax.lax.rsqrt(var1 + EPS) * g1_ref[...] + be1_ref[...])

    z = jnp.zeros((h.shape[0], w2_ref.shape[2]), jnp.float32)
    for j in range(k):
        z = z + jnp.dot(_circ_shift(h, j - pad), w2_ref[j],
                        preferred_element_type=jnp.float32)
    z = z + b2_ref[...] + skip_ref[0]
    z_ref[0] = z

    @pl.when(pl.program_id(0) == 0)
    def _init():
        stats2_ref[...] = jnp.zeros_like(stats2_ref)

    stats2_ref[...] += jnp.concatenate(
        [jnp.sum(z, axis=0, keepdims=True),
         jnp.sum(z * z, axis=0, keepdims=True)], axis=0)


def _stage3_kernel(z_ref, stats2_ref, g2_ref, be2_ref, out_ref, *, n_rows):
    """BN2 normalize + ELU (fully parallel over samples)."""
    inv_n = 1.0 / n_rows
    st = stats2_ref[...]
    mean2 = st[0:1, :] * inv_n
    var2 = st[1:2, :] * inv_n - mean2 * mean2
    out_ref[0] = _elu((z_ref[0] - mean2) * jax.lax.rsqrt(var2 + EPS)
                      * g2_ref[...] + be2_ref[...])


# ------------------------------- forward pass --------------------------------

def res_down_forward(x_ncl, p, kernel_size=3):
    n, c_in, l = x_ncl.shape
    k = kernel_size
    assert k % 2 == 1, "odd kernel_size required (symmetric circular padding)"
    assert l % 2 == 0, "even input length required for stride-2 down-sampling"
    lo = l // 2
    c_mid = p['w1'].shape[0]
    c_out = p['w2'].shape[0]

    cin_p = _round_up(c_in, LANE)
    cmid_p = _round_up(c_mid, LANE)
    cout_p = _round_up(c_out, LANE)
    n_rows = n * lo
    f32 = jnp.float32

    # NCL -> NLC, pad channels to lane width, fold stride-2 pairs into lanes.
    x_nlc = jnp.transpose(x_ncl, (0, 2, 1)).astype(f32)               # (N, L, Cin)
    x_pad = jnp.pad(x_nlc, ((0, 0), (0, 0), (0, cin_p - c_in)))
    x_fold = x_pad.reshape(n, lo, 2 * cin_p)                          # [even | odd]

    w1 = _repack_weight(p['w1'], cin_p, cmid_p)                       # (K,Cin_p,Cmid_p)
    w2 = _repack_weight(p['w2'], cmid_p, cout_p)
    w3 = _repack_weight(p['w3'], cin_p, cout_p)
    b1 = _pad_vec(p['b1'], cmid_p)
    b2 = _pad_vec(p['b2'], cout_p)
    b3 = _pad_vec(p['b3'], cout_p)
    g1 = _pad_vec(p['g1'], cmid_p)
    be1 = _pad_vec(p['be1'], cmid_p)
    g2 = _pad_vec(p['g2'], cout_p)
    be2 = _pad_vec(p['be2'], cout_p)

    def row_block(c):
        return pl.BlockSpec((1, lo, c), lambda i: (i, 0, 0))

    def full_block(shape):
        zeros = (0,) * len(shape)
        return pl.BlockSpec(tuple(shape), lambda i: zeros)

    def nbytes(*shapes):
        return sum(4 * math.prod(s) for s in shapes)

    # ---------- stage 1: conv1 + conv3 (skip) + BN1 stats ----------
    vlim1 = _vmem_limit(2 * nbytes((lo, 2 * cin_p), (lo, cmid_p), (lo, cout_p))
                        + nbytes(w1.shape, w3.shape, b1.shape, b3.shape, (2, cmid_p)))
    y1, skip, stats1 = pl.pallas_call(
        functools.partial(_stage1_kernel, cin_p=cin_p, k=k),
        grid=(n,),
        in_specs=[row_block(2 * cin_p),
                  full_block(w1.shape), full_block(b1.shape),
                  full_block(w3.shape), full_block(b3.shape)],
        out_specs=(row_block(cmid_p), row_block(cout_p),
                   pl.BlockSpec((2, cmid_p), lambda i: (0, 0))),
        out_shape=(jax.ShapeDtypeStruct((n, lo, cmid_p), f32),
                   jax.ShapeDtypeStruct((n, lo, cout_p), f32),
                   jax.ShapeDtypeStruct((2, cmid_p), f32)),
        compiler_params=pltpu.CompilerParams(
            dimension_semantics=("arbitrary",),     # stats accumulator is resident
            vmem_limit_bytes=vlim1),
    )(x_fold, w1, b1, w3, b3)

    # ---------- stage 2: BN1 norm + ELU + conv2 + add + BN2 stats ----------
    vlim2 = _vmem_limit(2 * nbytes((lo, cmid_p), (lo, cout_p), (lo, cout_p))
                        + nbytes(w2.shape, b2.shape, g1.shape, be1.shape,
                                 (2, cmid_p), (2, cout_p)))
    z, stats2 = pl.pallas_call(
        functools.partial(_stage2_kernel, n_rows=n_rows, k=k),
        grid=(n,),
        in_specs=[row_block(cmid_p), row_block(cout_p),
                  full_block(stats1.shape),
                  full_block(g1.shape), full_block(be1.shape),
                  full_block(w2.shape), full_block(b2.shape)],
        out_specs=(row_block(cout_p),
                   pl.BlockSpec((2, cout_p), lambda i: (0, 0))),
        out_shape=(jax.ShapeDtypeStruct((n, lo, cout_p), f32),
                   jax.ShapeDtypeStruct((2, cout_p), f32)),
        compiler_params=pltpu.CompilerParams(
            dimension_semantics=("arbitrary",),
            vmem_limit_bytes=vlim2),
    )(y1, skip, stats1, g1, be1, w2, b2)

    # ---------- stage 3: BN2 norm + ELU (parallel) ----------
    vlim3 = _vmem_limit(2 * nbytes((lo, cout_p), (lo, cout_p))
                        + nbytes((2, cout_p), g2.shape, be2.shape))
    out_p = pl.pallas_call(
        functools.partial(_stage3_kernel, n_rows=n_rows),
        grid=(n,),
        in_specs=[row_block(cout_p), full_block(stats2.shape),
                  full_block(g2.shape), full_block(be2.shape)],
        out_specs=row_block(cout_p),
        out_shape=jax.ShapeDtypeStruct((n, lo, cout_p), f32),
        compiler_params=pltpu.CompilerParams(
            dimension_semantics=("parallel",),
            vmem_limit_bytes=vlim3),
    )(z, stats2, g2, be2)

    out = out_p[:, :, :c_out]                       # strip lane padding
    return jnp.transpose(out, (0, 2, 1))            # NLC -> NCL


# ----------------------- deterministic parameter init ------------------------

def init_params(key, channel_in, channel_out, kernel_size=3):
    c_mid = channel_out // 2
    ks = jax.random.split(key, 6)

    def conv_init(kw, kb, c_out, c_in, k):
        bound = 1.0 / (c_in * k) ** 0.5
        w = jax.random.uniform(kw, (c_out, c_in, k), jnp.float32, -bound, bound)
        b = jax.random.uniform(kb, (c_out,), jnp.float32, -bound, bound)
        return w, b

    w1, b1 = conv_init(ks[0], ks[1], c_mid, channel_in, kernel_size)
    w2, b2 = conv_init(ks[2], ks[3], channel_out, c_mid, kernel_size)
    w3, b3 = conv_init(ks[4], ks[5], channel_out, channel_in, kernel_size)
    return dict(w1=w1, b1=b1, w2=w2, b2=b2, w3=w3, b3=b3,
                g1=jnp.ones((c_mid,), jnp.float32),
                be1=jnp.zeros((c_mid,), jnp.float32),
                g2=jnp.ones((channel_out,), jnp.float32),
                be2=jnp.zeros((channel_out,), jnp.float32))


# ----------------------------- pure-JAX reference ----------------------------

def _ref_circ_conv1d(x_ncl, w, b, stride, pad):
    xp = jnp.concatenate([x_ncl[..., -pad:], x_ncl, x_ncl[..., :pad]], axis=-1)
    y = jax.lax.conv_general_dilated(
        xp, w, window_strides=(stride,), padding='VALID',
        dimension_numbers=('NCH', 'OIH', 'NCH'),
        precision=jax.lax.Precision.HIGHEST)
    return y + b[None, :, None]


def _ref_bn_train(x_ncl, gamma, beta):
    mean = jnp.mean(x_ncl, axis=(0, 2), keepdims=True)
    var = jnp.mean((x_ncl - mean) ** 2, axis=(0, 2), keepdims=True)
    return ((x_ncl - mean) / jnp.sqrt(var + EPS)
            * gamma[None, :, None] + beta[None, :, None])


def res_down_reference(x_ncl, p, kernel_size=3):
    pad = kernel_size // 2
    skip = _ref_circ_conv1d(x_ncl, p['w3'], p['b3'], 2, pad)
    h = _elu(_ref_bn_train(_ref_circ_conv1d(x_ncl, p['w1'], p['b1'], 2, pad),
                           p['g1'], p['be1']))
    y = _ref_circ_conv1d(h, p['w2'], p['b2'], 1, pad)
    return _elu(_ref_bn_train(y + skip, p['g2'], p['be2']))


# ----------------------------------- main -------------------------------------

if __name__ == "__main__":
    key = jax.random.PRNGKey(0)
    k_params, k_x = jax.random.split(key)

    N, C_IN, C_OUT, L, K = 2, 4, 8, 16, 3
    params = init_params(k_params, C_IN, C_OUT, K)
    x = jax.random.normal(k_x, (N, C_IN, L), jnp.float32)        # PyTorch NCL

    out = res_down_forward(x, params, K)
    out = jax.block_until_ready(out)

    ref = res_down_reference(x, params, K)
    assert out.shape == (N, C_OUT, L // 2), out.shape
    max_err = float(jnp.max(jnp.abs(out - ref)))
    assert jnp.allclose(out, ref, rtol=1e-3, atol=1e-3), f"max_err={max_err}"

    print("KERNEL_OK")
</pallas_src>

<mosaic_0001>
module attributes {stable_mosaic.version = 11 : i64} {
  func.func @_stage1_kernel(%arg0: i32, %arg1: memref<1x8x256xf32, #tpu.memory_space<vmem>>, %arg2: memref<3x128x128xf32, #tpu.memory_space<vmem>>, %arg3: memref<1x128xf32, #tpu.memory_space<vmem>>, %arg4: memref<3x128x128xf32, #tpu.memory_space<vmem>>, %arg5: memref<1x128xf32, #tpu.memory_space<vmem>>, %arg6: memref<1x8x128xf32, #tpu.memory_space<vmem>>, %arg7: memref<1x8x128xf32, #tpu.memory_space<vmem>>, %arg8: memref<2x128xf32, #tpu.memory_space<vmem>>) attributes {dimension_semantics = [#tpu.dimension_semantics<arbitrary>], iteration_bounds = array<i64: 2>, scalar_prefetch = 0 : i64, scratch_operands = 0 : i64, tpu.core_type = #tpu.core_type<tc>, window_params = [{transform_indices = @transform_0, window_bounds = array<i64: 1, 8, 256>}, {pipeline_mode = #tpu.pipeline_mode<synchronous>, transform_indices = @transform_1, window_bounds = array<i64: 3, 128, 128>}, {pipeline_mode = #tpu.pipeline_mode<synchronous>, transform_indices = @transform_2, window_bounds = array<i64: 1, 128>}, {pipeline_mode = #tpu.pipeline_mode<synchronous>, transform_indices = @transform_3, window_bounds = array<i64: 3, 128, 128>}, {pipeline_mode = #tpu.pipeline_mode<synchronous>, transform_indices = @transform_4, window_bounds = array<i64: 1, 128>}, {transform_indices = @transform_5, window_bounds = array<i64: 1, 8, 128>}, {transform_indices = @transform_6, window_bounds = array<i64: 1, 8, 128>}, {pipeline_mode = #tpu.pipeline_mode<synchronous>, transform_indices = @transform_7, window_bounds = array<i64: 2, 128>}]} {
    %c0 = arith.constant 0 : index
    %c0_0 = arith.constant 0 : index
    %c0_1 = arith.constant 0 : index
    %0 = vector.load %arg1[%c0, %c0_0, %c0_1] : memref<1x8x256xf32, #tpu.memory_space<vmem>>, vector<1x8x256xf32>
    %1 = vector.shape_cast %0 : vector<1x8x256xf32> to vector<8x256xf32>
    %2 = vector.extract_strided_slice %1 {offsets = [0, 0], sizes = [8, 128], strides = [1, 1]} : vector<8x256xf32> to vector<8x128xf32>
    %3 = vector.extract_strided_slice %1 {offsets = [0, 128], sizes = [8, 128], strides = [1, 1]} : vector<8x256xf32> to vector<8x128xf32>
    %cst = arith.constant 0.000000e+00 : f32
    %4 = vector.broadcast %cst : f32 to vector<8x128xf32>
    %cst_2 = arith.constant 0.000000e+00 : f32
    %5 = vector.broadcast %cst_2 : f32 to vector<8x128xf32>
    %6 = vector.extract_strided_slice %3 {offsets = [7, 0], sizes = [1, 128], strides = [1, 1]} : vector<8x128xf32> to vector<1x128xf32>
    %7 = vector.extract_strided_slice %3 {offsets = [0, 0], sizes = [7, 128], strides = [1, 1]} : vector<8x128xf32> to vector<7x128xf32>
    %8 = tpu.concatenate %6, %7 in 0 : vector<1x128xf32>, vector<7x128xf32> -> vector<8x128xf32>
    %c0_3 = arith.constant 0 : index
    %c0_4 = arith.constant 0 : index
    %c0_5 = arith.constant 0 : index
    %9 = vector.load %arg2[%c0_3, %c0_4, %c0_5] : memref<3x128x128xf32, #tpu.memory_space<vmem>>, vector<1x128x128xf32>
    %10 = vector.shape_cast %9 : vector<1x128x128xf32> to vector<128x128xf32>
    %cst_6 = arith.constant dense<0.000000e+00> : vector<8x128xf32>
    %11 = tpu.matmul %8, %10, %cst_6 {dimension_numbers = #tpu.dot_dimension_numbers<[1], [0], [0], [1], [0, 0, 1, 1], [], []>} : vector<8x128xf32>, vector<128x128xf32>, vector<8x128xf32> -> vector<8x128xf32>
    %12 = arith.addf %4, %11 : vector<8x128xf32>
    %c0_7 = arith.constant 0 : index
    %c0_8 = arith.constant 0 : index
    %c0_9 = arith.constant 0 : index
    %13 = vector.load %arg4[%c0_7, %c0_8, %c0_9] : memref<3x128x128xf32, #tpu.memory_space<vmem>>, vector<1x128x128xf32>
    %14 = vector.shape_cast %13 : vector<1x128x128xf32> to vector<128x128xf32>
    %cst_10 = arith.constant dense<0.000000e+00> : vector<8x128xf32>
    %15 = tpu.matmul %8, %14, %cst_10 {dimension_numbers = #tpu.dot_dimension_numbers<[1], [0], [0], [1], [0, 0, 1, 1], [], []>} : vector<8x128xf32>, vector<128x128xf32>, vector<8x128xf32> -> vector<8x128xf32>
    %16 = arith.addf %5, %15 : vector<8x128xf32>
    %c1 = arith.constant 1 : index
    %c0_11 = arith.constant 0 : index
    %c0_12 = arith.constant 0 : index
    %17 = vector.load %arg2[%c1, %c0_11, %c0_12] : memref<3x128x128xf32, #tpu.memory_space<vmem>>, vector<1x128x128xf32>
    %18 = vector.shape_cast %17 : vector<1x128x128xf32> to vector<128x128xf32>
    %cst_13 = arith.constant dense<0.000000e+00> : vector<8x128xf32>
    %19 = tpu.matmul %2, %18, %cst_13 {dimension_numbers = #tpu.dot_dimension_numbers<[1], [0], [0], [1], [0, 0, 1, 1], [], []>} : vector<8x128xf32>, vector<128x128xf32>, vector<8x128xf32> -> vector<8x128xf32>
    %20 = arith.addf %12, %19 : vector<8x128xf32>
    %c1_14 = arith.constant 1 : index
    %c0_15 = arith.constant 0 : index
    %c0_16 = arith.constant 0 : index
    %21 = vector.load %arg4[%c1_14, %c0_15, %c0_16] : memref<3x128x128xf32, #tpu.memory_space<vmem>>, vector<1x128x128xf32>
    %22 = vector.shape_cast %21 : vector<1x128x128xf32> to vector<128x128xf32>
    %cst_17 = arith.constant dense<0.000000e+00> : vector<8x128xf32>
    %23 = tpu.matmul %2, %22, %cst_17 {dimension_numbers = #tpu.dot_dimension_numbers<[1], [0], [0], [1], [0, 0, 1, 1], [], []>} : vector<8x128xf32>, vector<128x128xf32>, vector<8x128xf32> -> vector<8x128xf32>
    %24 = arith.addf %16, %23 : vector<8x128xf32>
    %c2 = arith.constant 2 : index
    %c0_18 = arith.constant 0 : index
    %c0_19 = arith.constant 0 : index
    %25 = vector.load %arg2[%c2, %c0_18, %c0_19] : memref<3x128x128xf32, #tpu.memory_space<vmem>>, vector<1x128x128xf32>
    %26 = vector.shape_cast %25 : vector<1x128x128xf32> to vector<128x128xf32>
    %cst_20 = arith.constant dense<0.000000e+00> : vector<8x128xf32>
    %27 = tpu.matmul %3, %26, %cst_20 {dimension_numbers = #tpu.dot_dimension_numbers<[1], [0], [0], [1], [0, 0, 1, 1], [], []>} : vector<8x128xf32>, vector<128x128xf32>, vector<8x128xf32> -> vector<8x128xf32>
    %28 = arith.addf %20, %27 : vector<8x128xf32>
    %c2_21 = arith.constant 2 : index
    %c0_22 = arith.constant 0 : index
    %c0_23 = arith.constant 0 : index
    %29 = vector.load %arg4[%c2_21, %c0_22, %c0_23] : memref<3x128x128xf32, #tpu.memory_space<vmem>>, vector<1x128x128xf32>
    %30 = vector.shape_cast %29 : vector<1x128x128xf32> to vector<128x128xf32>
    %cst_24 = arith.constant dense<0.000000e+00> : vector<8x128xf32>
    %31 = tpu.matmul %3, %30, %cst_24 {dimension_numbers = #tpu.dot_dimension_numbers<[1], [0], [0], [1], [0, 0, 1, 1], [], []>} : vector<8x128xf32>, vector<128x128xf32>, vector<8x128xf32> -> vector<8x128xf32>
    %32 = arith.addf %24, %31 : vector<8x128xf32>
    %c0_25 = arith.constant 0 : index
    %c0_26 = arith.constant 0 : index
    %33 = vector.load %arg3[%c0_25, %c0_26] : memref<1x128xf32, #tpu.memory_space<vmem>>, vector<1x128xf32>
    %34 = vector.broadcast %33 : vector<1x128xf32> to vector<8x128xf32>
    %35 = arith.addf %28, %34 : vector<8x128xf32>
    %c0_27 = arith.constant 0 : index
    %c0_28 = arith.constant 0 : index
    %36 = vector.load %arg5[%c0_27, %c0_28] : memref<1x128xf32, #tpu.memory_space<vmem>>, vector<1x128xf32>
    %37 = vector.broadcast %36 : vector<1x128xf32> to vector<8x128xf32>
    %38 = arith.addf %32, %37 : vector<8x128xf32>
    %c0_29 = arith.constant 0 : index
    %c0_30 = arith.constant 0 : index
    %c0_31 = arith.constant 0 : index
    %39 = vector.load %arg6[%c0_29, %c0_30, %c0_31] : memref<1x8x128xf32, #tpu.memory_space<vmem>>, vector<1x8x128xf32>
    %40 = vector.shape_cast %39 : vector<1x8x128xf32> to vector<8x128xf32>
    %41 = vector.shape_cast %35 : vector<8x128xf32> to vector<1x8x128xf32>
    tpu.vector_store %arg6[%c0_29, %c0_30, %c0_31], %41 {strides = array<i32>} : memref<1x8x128xf32, #tpu.memory_space<vmem>>, vector<1x8x128xf32>,
    %c0_32 = arith.constant 0 : index
    %c0_33 = arith.constant 0 : index
    %c0_34 = arith.constant 0 : index
    %42 = vector.load %arg7[%c0_32, %c0_33, %c0_34] : memref<1x8x128xf32, #tpu.memory_space<vmem>>, vector<1x8x128xf32>
    %43 = vector.shape_cast %42 : vector<1x8x128xf32> to vector<8x128xf32>
    %44 = vector.shape_cast %38 : vector<8x128xf32> to vector<1x8x128xf32>
    tpu.vector_store %arg7[%c0_32, %c0_33, %c0_34], %44 {strides = array<i32>} : memref<1x8x128xf32, #tpu.memory_space<vmem>>, vector<1x8x128xf32>,
    %c0_i32 = arith.constant 0 : i32
    %45 = arith.cmpi eq, %arg0, %c0_i32 : i32
    %46 = arith.extui %45 : i1 to i32
    %c0_i32_35 = arith.constant 0 : i32
    %47 = arith.cmpi ne, %46, %c0_i32_35 : i32
    scf.if %47 {
      %cst_42 = arith.constant 0.000000e+00 : f32
      %57 = vector.broadcast %cst_42 : f32 to vector<2x128xf32>
      %c0_43 = arith.constant 0 : index
      %c0_44 = arith.constant 0 : index
      %58 = vector.load %arg8[%c0_43, %c0_44] : memref<2x128xf32, #tpu.memory_space<vmem>>, vector<2x128xf32>
      tpu.vector_store %arg8[%c0_43, %c0_44], %57 {strides = array<i32>} : memref<2x128xf32, #tpu.memory_space<vmem>>, vector<2x128xf32>,
    } else {
    }
    %c0_36 = arith.constant 0 : index
    %c0_37 = arith.constant 0 : index
    %48 = vector.load %arg8[%c0_36, %c0_37] : memref<2x128xf32, #tpu.memory_space<vmem>>, vector<2x128xf32>
    %cst_38 = arith.constant dense<0.000000e+00> : vector<128xf32>
    %49 = vector.multi_reduction <add>, %35, %cst_38 [0] : vector<8x128xf32> to vector<128xf32>
    %50 = vector.shape_cast %49 : vector<128xf32> to vector<1x128xf32>
    %51 = arith.mulf %35, %35 : vector<8x128xf32>
    %cst_39 = arith.constant dense<0.000000e+00> : vector<128xf32>
    %52 = vector.multi_reduction <add>, %51, %cst_39 [0] : vector<8x128xf32> to vector<128xf32>
    %53 = vector.shape_cast %52 : vector<128xf32> to vector<1x128xf32>
    %54 = tpu.concatenate %50, %53 in 0 : vector<1x128xf32>, vector<1x128xf32> -> vector<2x128xf32>
    %55 = arith.addf %48, %54 : vector<2x128xf32>
    %c0_40 = arith.constant 0 : index
    %c0_41 = arith.constant 0 : index
    %56 = vector.load %arg8[%c0_40, %c0_41] : memref<2x128xf32, #tpu.memory_space<vmem>>, vector<2x128xf32>
    tpu.vector_store %arg8[%c0_40, %c0_41], %55 {strides = array<i32>} : memref<2x128xf32, #tpu.memory_space<vmem>>, vector<2x128xf32>,
    return
  }
  func.func @transform_0(%arg0: i32) -> (i32, i32, i32) {
    %c0_i32 = arith.constant 0 : i32
    %c0_i32_0 = arith.constant 0 : i32
    %c0_i32_1 = arith.constant 0 : i32
    return %arg0, %c0_i32, %c0_i32_0 : i32, i32, i32
  }
  func.func @transform_1(%arg0: i32) -> (i32, i32, i32) {
    %c0_i32 = arith.constant 0 : i32
    %c0_i32_0 = arith.constant 0 : i32
    %c0_i32_1 = arith.constant 0 : i32
    %c0_i32_2 = arith.constant 0 : i32
    return %c0_i32, %c0_i32_0, %c0_i32_1 : i32, i32, i32
  }
  func.func @transform_2(%arg0: i32) -> (i32, i32) {
    %c0_i32 = arith.constant 0 : i32
    %c0_i32_0 = arith.constant 0 : i32
    %c0_i32_1 = arith.constant 0 : i32
    return %c0_i32, %c0_i32_0 : i32, i32
  }
  func.func @transform_3(%arg0: i32) -> (i32, i32, i32) {
    %c0_i32 = arith.constant 0 : i32
    %c0_i32_0 = arith.constant 0 : i32
    %c0_i32_1 = arith.constant 0 : i32
    %c0_i32_2 = arith.constant 0 : i32
    return %c0_i32, %c0_i32_0, %c0_i32_1 : i32, i32, i32
  }
  func.func @transform_4(%arg0: i32) -> (i32, i32) {
    %c0_i32 = arith.constant 0 : i32
    %c0_i32_0 = arith.constant 0 : i32
    %c0_i32_1 = arith.constant 0 : i32
    return %c0_i32, %c0_i32_0 : i32, i32
  }
  func.func @transform_5(%arg0: i32) -> (i32, i32, i32) {
    %c0_i32 = arith.constant 0 : i32
    %c0_i32_0 = arith.constant 0 : i32
    %c0_i32_1 = arith.constant 0 : i32
    return %arg0, %c0_i32, %c0_i32_0 : i32, i32, i32
  }
  func.func @transform_6(%arg0: i32) -> (i32, i32, i32) {
    %c0_i32 = arith.constant 0 : i32
    %c0_i32_0 = arith.constant 0 : i32
    %c0_i32_1 = arith.constant 0 : i32
    return %arg0, %c0_i32, %c0_i32_0 : i32, i32, i32
  }
  func.func @transform_7(%arg0: i32) -> (i32, i32) {
    %c0_i32 = arith.constant 0 : i32
    %c0_i32_0 = arith.constant 0 : i32
    %c0_i32_1 = arith.constant 0 : i32
    return %c0_i32, %c0_i32_0 : i32, i32
  }
}

</mosaic_0001>

<bundles_post_ra>
// kernel: tpu_custom_call.1
= control target key start
LH: loop header
LB: loop body
LE: loop exit
PB: predicated region body
PF: predicated region fallthrough
CT: control target
= control target key end

     0   :  { %13 = vsyncpa [#allocation3], 0  ;;  %s2284_s0 = inlined_call_operand.hbm [shape: f32[2,8,256], index: 0, kind: input, shape index: {}]   ;;  %s2285_s1 = inlined_call_operand.hbm [shape: f32[3,128,128], index: 1, kind: input, shape index: {}]   ;;  %s2286_s2 = inlined_call_operand.vmem [shape: f32[1,128], index: 2, kind: input, shape index: {}]   ;;  %s2287_s3 = inlined_call_operand.hbm [shape: f32[3,128,128], index: 3, kind: input, shape index: {}]   ;;  %s2288_s4 = inlined_call_operand.vmem [shape: f32[1,128], index: 4, kind: input, shape index: {}]   ;;  %s2289_s5 = inlined_call_operand.hbm [shape: f32[2,8,128], index: 5, kind: output, shape index: {0}]   ;;  %s2290_s6 = inlined_call_operand.hbm [shape: f32[2,8,128], index: 6, kind: output, shape index: {1}]   ;;  %s2291_s7 = inlined_call_operand.hbm [shape: f32[2,128], index: 7, kind: output, shape index: {2}]  }
   0x1   :  { %15 = vsyncpa [#allocation3 + $0x1], 0 }
   0x2   :  { %16 = vsyncpa [#allocation6], 0 }
   0x3   :  { %17 = vsyncpa [#allocation4], 0 }
   0x4   :  { %19 = vsyncpa [#allocation4 + $0x1], 0 }
   0x5   :  { %20 = vsyncpa [#allocation10], 0 }
   0x6   :  { %22 = vsyncpa [#allocation10 + $0x1], 0  ;;  %s1914_s24 = smov 0   ;;  %s1916_s25 = smov 0  }
   0x7   :  { %s1918_s26 = smov 0   ;;  %s1920_s27 = smov 0  }
   0x8 LB: > { %s1935_s28 = sadd.s32 4294967295, %s1860_s27   ;;  %s2295_s29 = sadd.s32 4294967294, %s1860_s27   ;;  %s1860_s27 = sphi %s1920_s27, %s2319_s27   ;;  %s1856_s26 = sphi %s1918_s26, %s2318_s26   ;;  %s1852_s25 = sphi %s1916_s25, %s2317_s25   ;;  %s1848_s24 = sphi %s1914_s24, %s2316_s24  }
   0x9   : > { %p48_p0 = scmp.ne.s32.totalorder %s1852_s25, %s1848_s24  ;;  %p2292_p1 = scmp.eq.s32.totalorder %s1935_s28, 0 }
   0xa   : > { %p162_p3 = scmp.eq.s32.totalorder %s2295_s29, 1  ;;  %p1076_p5 = scmp.ge.s32.totalorder %s1860_s27, 1 }
   0xb   : > { %p1946_p4 = por %p2292_p1, %p48_p0  ;;  %p216_p7 = scmp.lt.s32.totalorder %s1860_s27, 3 }
   0xc   : > { %p1951_p6 = por %p162_p3, %p48_p0  ;;  %s1862_s10 = smov [#allocation5]  }
   0xd   : > { %s2296_s30 = scalar_select %p1946_p4, 1, 0 }
   0xe   : > { %s2297_s8 = scalar_select %p1951_p6, 1, 0 }
   0xf   : > { %p1957_p9 = pnand %p1076_p5, %p216_p7  ;;  %s228_s11 = sshll.u32 %s1862_s10, 4  ;;  %s1961_s11 = int_to_ptr.vmem [resolvable:$true] %s228_s11 }
  0x10   : > { %s1863_s13 = smov [#allocation7]   ;;  %s1642_s17 = scalar_lea.hbm %s2285_s1, 6144 }
  0x11   : > { %p1575_p10 = pneg %p1957_p9  ;;  %s244_s14 = sshll.u32 %s1863_s13, 4  ;;  %s1972_s14 = int_to_ptr.vmem [resolvable:$true] %s244_s14 }
  0x12   : > { %p1643_p13 = scmp.ne.s32.totalorder %s2285_s1, %s1642_s17  ;;  %p1649_p7 = scmp.lt.u32.totalorder %s1642_s17, %s2285_s1 }
  0x13   : > { %p1968_p12 = pnand %p1575_p10, %p2292_p1 }
  0x15   : > { %p1644_p0 = pneg %p1968_p12 }
  0x17   : > { %p1645_p3 = pnand %p1644_p0, %p1643_p13 }
  0x19   : > { %p1646_p5 = pneg %p1645_p3 }
  0x1b   : > { %p1651_p10 = pnand %p1649_p7, %p1646_p5 }
  0x1d   : > { %1654 = shalt.err (!%p1651_p10)
}
  0x1e   : > { %s1655_s22 = scalar_lea.vmem %s1961_s11, 6144  ;;  %p1663_p2 = scmp.lt.s32.totalorder %s1961_s11, %s1961_s11 }
  0x1f   : > { %p1656_p11 = scmp.ne.s32.totalorder %s1961_s11, %s1655_s22  ;;  %p1664_p13 = scmp.lt.s32.totalorder %s1655_s22, %s1655_s22 }
  0x21   : > { %p1658_p8 = pnand %p1656_p11, %p1644_p0  ;;  %p1665_p3 = por %p1664_p13, %p1663_p2 }
  0x23   : > { %p1659_p1 = pneg %p1658_p8 }
  0x25   : > { %p1666_p6 = pnand %p1665_p3, %p1659_p1 }
  0x27   : > { %1669 = shalt.err (!%p1666_p6)
}
  0x28   : > { %s1864_s23 = smov 128   ;;  %s1865_s10 = smov 8  }
  0x29   : > { %1578 = dma.hbm_to_vmem [thread:$0]  (!%p1968_p12), %s2285_s1, 6144, %s1961_s11, [#allocation6], %s1864_s23, %s1864_s23, %s1865_s10  }
  0x2a   : > { %s1670_s18 = scalar_lea.hbm %s2287_s3, 6144 }
  0x2b   : > { %p1671_p2 = scmp.ne.s32.totalorder %s2287_s3, %s1670_s18  ;;  %p1677_p8 = scmp.lt.u32.totalorder %s1670_s18, %s2287_s3 }
  0x2d   : > { %p1673_p1 = pnand %p1671_p2, %p1644_p0 }
  0x2f   : > { %p1674_p6 = pneg %p1673_p1 }
  0x31   : > { %p1679_p11 = pnand %p1677_p8, %p1674_p6 }
  0x33   : > { %1682 = shalt.err (!%p1679_p11)
}
  0x34   : > { %s1683_s11 = scalar_lea.vmem %s1972_s14, 6144  ;;  %p1691_p13 = scmp.lt.s32.totalorder %s1972_s14, %s1972_s14 }
  0x35   : > { %p1684_p5 = scmp.ne.s32.totalorder %s1972_s14, %s1683_s11  ;;  %p1692_p3 = scmp.lt.s32.totalorder %s1683_s11, %s1683_s11 }
  0x37   : > { %p1686_p7 = pnand %p1684_p5, %p1644_p0  ;;  %p1693_p2 = por %p1692_p3, %p1691_p13 }
  0x39   : > { %p1687_p10 = pneg %p1686_p7 }
  0x3b   : > { %p1694_p1 = pnand %p1693_p2, %p1687_p10 }
  0x3d   : > { %1697 = shalt.err (!%p1694_p1)
}
  0x3e   : > { %1581 = dma.hbm_to_vmem [thread:$0]  (!%p1968_p12), %s2287_s3, 6144, %s1972_s14, [#allocation6], %s1864_s23, %s1864_s23, %s1865_s10  }
  0x3f   : > { %s2027_s16 = sadd.s32 1, %s1860_s27   ;;  %s35_s12 = sadd.s32 1, %s1856_s26 }
  0x40   : > { %s32_s17 = ssub.s32 %s1860_s27, %s2027_s16  ;;  %p42_p0 = scmp.ne.s32.totalorder %s1856_s26, %s1852_s25 }
  0x41   : > { %p33_p6 = scmp.eq.s32.totalorder %s32_s17, 0  ;;  %p43_p8 = scmp.eq.s32.totalorder %s1860_s27, 0 }
  0x42   : > { %p2300_p11 = scmp.eq.s32.totalorder %s1935_s28, 1  ;;  %p1595_p7 = scmp.lt.s32.totalorder %s1860_s27, 2 }
  0x43   : > { %s2043_s19 = scalar_select %p33_p6, %s1856_s26, %s35_s12  }
  0x44   : > { %p2037_p5 = por %p2300_p11, %p42_p0  ;;  %p44_p10 = por %p43_p8, %p42_p0 }
  0x45   : > { %s261_s20 = sand.u32 1, %s1856_s26   ;;  %s1100_s14 = sshll.u32 %s1860_s27, 8 }
  0x46   : > { %s2301_s18 = scalar_select %p2037_p5, 1, 0 }
  0x47   : > { %s1080_s21 = sshll.u32 %s261_s20, 4  ;;  %s2050_s22 = scalar_lea.hbm %s2284_s0, %s1100_s14 }
  0x48   : > { %s265_s11 = scalar_lea.vmem [#allocation2], %s1080_s21  ;;  %p2054_p12 = pnand %p1595_p7, %p44_p10 }
  0x49   : > { %s273_s13 = sshll.u32 %s265_s11, 4  ;;  %s262_s12 = scalar_lea.sflag [#allocation3], %s261_s20  ;;  %s2052_s13 = int_to_ptr.vmem [resolvable:$true] %s273_s13 }
  0x4a   : > { %s1698_s17 = scalar_lea.hbm %s2050_s22, 256  ;;  %p1700_p3 = pneg %p2054_p12 }
  0x4b   : > { %p1699_p13 = scmp.ne.s32.totalorder %s2050_s22, %s1698_s17  ;;  %s1703_s23 = scalar_lea.hbm %s2284_s0, 512 }
  0x4c   : > { %p1704_p0 = scmp.lt.u32.totalorder %s2050_s22, %s2284_s0  ;;  %p1705_p6 = scmp.lt.u32.totalorder %s1703_s23, %s1698_s17 }
  0x4d   : > { %p1701_p2 = pnand %p1700_p3, %p1699_p13  ;;  %p1707_p11 = scmp.lt.u32.totalorder %s1698_s17, %s2050_s22 }
  0x4e   : > { %p1706_p8 = por %p1705_p6, %p1704_p0 }
  0x4f   : > { %p1702_p1 = pneg %p1701_p2 }
  0x50   : > { %p1708_p7 = por %p1707_p11, %p1706_p8 }
  0x52   : > { %p1709_p10 = pnand %p1708_p7, %p1702_p1 }
  0x54   : > { %1712 = shalt.err (!%p1709_p10)
}
  0x55   : > { %s1713_s20 = scalar_lea.vmem %s2052_s13, 256  ;;  %s1866_s14 = smov [#allocation2]  }
  0x56   : > { %p1714_p13 = scmp.ne.s32.totalorder %s2052_s13, %s1713_s20  ;;  %s1718_s21 = sshll.u32 %s1866_s14, 4  ;;  %s1719_s21 = int_to_ptr.vmem [resolvable:$false] %s1718_s21 }
  0x57   : > { %s1720_s10 = scalar_lea.vmem %s1719_s21, 512  ;;  %p1721_p4 = scmp.lt.s32.totalorder %s2052_s13, %s1719_s21 }
  0x58   : > { %p1716_p2 = pnand %p1714_p13, %p1700_p3  ;;  %p1722_p0 = scmp.lt.s32.totalorder %s1720_s10, %s1713_s20 }
  0x5a   : > { %p1717_p5 = pneg %p1716_p2  ;;  %p1723_p6 = por %p1722_p0, %p1721_p4 }
  0x5c   : > { %p1724_p8 = pnand %p1723_p6, %p1717_p5 }
  0x5e   : > { %1727 = shalt.err (!%p1724_p8)
}
  0x5f   : > { %1585 = dma.hbm_to_vmem [thread:$0]  (!%p2054_p12), %s2050_s22, 256, %s2052_s13, %s262_s12  }
  0x60   : > { %282 = sbr.rel (%p1957_p9) target bundleno = 501 (0x1f5), region = 40  ;;  %s2086_s17 = sand.u32 (!%p1957_p9), 1, %s1852_s25  }
  0x61   : > { %s1084_s23 = sshll.u32 (!%p1957_p9), %s2086_s17, 4  ;;  %s285_s11 = scalar_lea.sflag (!%p1957_p9), [#allocation3], %s2086_s17 }
  0x62   : > { %s2090_s20 = scalar_lea.vmem (!%p1957_p9), [#allocation2], %s1084_s23  ;;  %p2303_p4 = scmp.ne.s32.totalorder (!%p1957_p9), %s2296_s30, 0 }
  0x67   : > { %1827 = dma.done.wait (%p2303_p4), %s285_s11, 256  }
  0x68   : > { %1829 = vsyncadd (%p2303_p4), %s285_s11, 4294967040  ;;  %p2304_p5 = scmp.eq.s32.totalorder %s1935_s28, 0 }
  0x6a   : > { %1831 = dma.done.wait (%p2304_p5), [#allocation6], 12288   ;;  %p2305_p9 = pmov %p2304_p5 }
  0x6b   : > { %vm337_vm0 = vcmask 1040384   ;;  %v1867_v0 = vmov 0.0|0.0   ;;  %vm1868_vm1 = vmmov 0   ;;  %v1869_v1 = vmov 0.0   ;;  %v372_v2 = vld [vmem:[#allocation5 + $0x80] sm:$0xff]  ;;  %v373_v3 = vld [vmem:[#allocation5 + $0x88] sm:$0xff] }
  0x6c   : > { %1833 = vsyncadd (%p2305_p9), [#allocation6], 4294955008  ;;  %1413 = vmatprep.subr.bf16.mxu0 %v1867_v0  ;;  %1437 = vmatprep.subr.bf16.mxu1 %v1867_v0  ;;  %v339_v4 = vld [vmem:[#allocation5] sm:$0xff]  ;;  %v1414_v5 = vpack.c.bf16 %v373_v3, %v372_v2  ;;  %v340_v6 = vld [vmem:[#allocation5 + $0x8] sm:$0xff]  ;;  %s1087_s30 = sshll.u32 %s2086_s17, 3  ;;  %p2306_p12 = scmp.ne.s32.totalorder %s1935_s28, 0 }
  0x6d   : > { %1235 = vmatprep.mubr.msk.f32.mxu0 %vm1868_vm1, %v1869_v1  ;;  %1270 = vmatprep.mubr.msk.f32.mxu1 %vm1868_vm1, %v1869_v1  ;;  %v374_v7 = vld [vmem:[#allocation5 + $0x90] sm:$0xff]  ;;  %v375_v8 = vld [vmem:[#allocation5 + $0x98] sm:$0xff]  ;;  %v1438_v9 = vpack.c.bf16 %v340_v6, %v339_v4  ;;  %v376_v14 = vld [vmem:[#allocation5 + $0xa0] sm:$0xff]  ;;  %s2182_s12 = scalar_lea.vmem [#allocation8], %s1087_s30  ;;  %s329_s14 = scalar_lea.vmem [#allocation9], %s1087_s30 }
  0x6e   : > { %v341_v10 = vld [vmem:[#allocation5 + $0x10] sm:$0xff]  ;;  %v342_v11 = vld [vmem:[#allocation5 + $0x18] sm:$0xff]  ;;  %1415 = vmatpush3.bf16.msra.mxu0 %v1414_v5  ;;  %v1417_v12 = vpack.c.bf16 %v375_v8, %v374_v7  ;;  %v377_v15 = vld [vmem:[#allocation5 + $0xa8] sm:$0xff] }
  0x6f   : > { %1439 = vmatpush3.bf16.msra.mxu1 %v1438_v9  ;;  %1416 = vmatprep.subr.bf16.mxu0 %v1867_v0  ;;  %v1441_v13 = vpack.c.bf16 %v342_v11, %v341_v10  ;;  %v343_v16 = vld [vmem:[#allocation5 + $0x20] sm:$0xff]  ;;  %v344_v17 = vld [vmem:[#allocation5 + $0x28] sm:$0xff]  ;;  %v1420_v18 = vpack.c.bf16 %v377_v15, %v376_v14  ;;  %v378_v20 = vld [vmem:[#allocation5 + $0xb0] sm:$0xff] }
  0x70   : > { %1440 = vmatprep.subr.bf16.mxu1 %v1867_v0  ;;  %v1444_v19 = vpack.c.bf16 %v344_v17, %v343_v16  ;;  %v379_v21 = vld [vmem:[#allocation5 + $0xb8] sm:$0xff]  ;;  %v345_v22 = vld [vmem:[#allocation5 + $0x30] sm:$0xff]  ;;  %v380_v26 = vld [vmem:[#allocation5 + $0xc0] sm:$0xff] }
  0x71   : > { %v346_v23 = vld [vmem:[#allocation5 + $0x38] sm:$0xff]  ;;  %v1423_v24 = vpack.c.bf16 %v379_v21, %v378_v20  ;;  %v381_v27 = vld [vmem:[#allocation5 + $0xc8] sm:$0xff]  ;;  %v347_v28 = vld [vmem:[#allocation5 + $0x40] sm:$0xff] }
  0x72   : > { %1418 = vmatpush3.bf16.msra.mxu0 %v1417_v12  ;;  %v1447_v25 = vpack.c.bf16 %v346_v23, %v345_v22  ;;  %v348_v29 = vld [vmem:[#allocation5 + $0x48] sm:$0xff]  ;;  %v1426_v30 = vpack.c.bf16 %v381_v27, %v380_v26  ;;  %v382_v32 = vld [vmem:[#allocation5 + $0xd0] sm:$0xff]  ;;  %v383_v33 = vld [vmem:[#allocation5 + $0xd8] sm:$0xff] }
  0x73   : > { %1442 = vmatpush3.bf16.msra.mxu1 %v1441_v13  ;;  %1419 = vmatprep.subr.bf16.mxu0 %v1867_v0  ;;  %v1450_v31 = vpack.c.bf16 %v348_v29, %v347_v28  ;;  %v349_v34 = vld [vmem:[#allocation5 + $0x50] sm:$0xff]  ;;  %v350_v35 = vld [vmem:[#allocation5 + $0x58] sm:$0xff]  ;;  %v1429_v36 = vpack.c.bf16 %v383_v33, %v382_v32  ;;  %v384_v38 = vld [vmem:[#allocation5 + $0xe0] sm:$0xff] }
  0x74   : > { %1443 = vmatprep.subr.bf16.mxu1 %v1867_v0  ;;  %v1453_v37 = vpack.c.bf16 %v350_v35, %v349_v34  ;;  %v385_v39 = vld [vmem:[#allocation5 + $0xe8] sm:$0xff]  ;;  %v351_v40 = vld [vmem:[#allocation5 + $0x60] sm:$0xff]  ;;  %v386_v44 = vld [vmem:[#allocation5 + $0xf0] sm:$0xff] }
  0x75   : > { %v352_v41 = vld [vmem:[#allocation5 + $0x68] sm:$0xff]  ;;  %v1432_v42 = vpack.c.bf16 %v385_v39, %v384_v38  ;;  %v387_v45 = vld [vmem:[#allocation5 + $0xf8] sm:$0xff]  ;;  %v353_v46 = vld [vmem:[#allocation5 + $0x70] sm:$0xff] }
  0x76   : > { %1421 = vmatpush3.bf16.msra.mxu0 %v1420_v18  ;;  %v1456_v43 = vpack.c.bf16 %v352_v41, %v351_v40  ;;  %v354_v47 = vld [vmem:[#allocation5 + $0x78] sm:$0xff]  ;;  %v1435_v48 = vpack.c.bf16 %v387_v45, %v386_v44  ;;  %v529_v51 = vld [vmem:[#allocation7 + $0x80] sm:$0xff]  ;;  %v530_v52 = vld [vmem:[#allocation7 + $0x88] sm:$0xff] }
  0x77   : > { %1445 = vmatpush3.bf16.msra.mxu1 %v1444_v19  ;;  %1422 = vmatprep.subr.bf16.mxu0 %v1867_v0  ;;  %v1459_v49 = vpack.c.bf16 %v354_v47, %v353_v46  ;;  %v2120_v50 = vld [vmem:[%s2090_s20 + $0x8] sm:$0xff]  ;;  %v355_v53 = vld [vmem:[#allocation7] sm:$0xff]  ;;  %v1462_v57 = vpack.c.bf16 %v530_v52, %v529_v51  ;;  %v531_v59 = vld [vmem:[#allocation7 + $0x90] sm:$0xff] }
  0x78   : > { %1446 = vmatprep.subr.bf16.mxu1 %v1867_v0  ;;  %v356_v54 = vld [vmem:[#allocation7 + $0x8] sm:$0xff]  ;;  %v2124_v55 = vld [vmem:[%s2090_s20] sm:$0xff]  ;;  %v335_v56 = vrot.slane %v2120_v50, 7  ;;  %v532_v60 = vld [vmem:[#allocation7 + $0x98] sm:$0xff] }
  0x79   : > { %v1486_v58 = vpack.c.bf16 %v356_v54, %v355_v53  ;;  %v357_v61 = vld [vmem:[#allocation7 + $0x10] sm:$0xff]  ;;  %v358_v62 = vld [vmem:[#allocation7 + $0x18] sm:$0xff]  ;;  %v1465_v63 = vpack.c.bf16 %v532_v60, %v531_v59  ;;  %v533_v3 = vld [vmem:[#allocation7 + $0xa0] sm:$0xff] }
  0x7a   : > { %1424 = vmatpush3.bf16.msra.mxu0 %v1423_v24  ;;  %v1489_v2 = vpack.c.bf16 %v358_v62, %v357_v61  ;;  %v534_v4 = vld [vmem:[#allocation7 + $0xa8] sm:$0xff]  ;;  %v359_v5 = vld [vmem:[#allocation7 + $0x20] sm:$0xff]  ;;  %v535_v9 = vld [vmem:[#allocation7 + $0xb0] sm:$0xff] }
  0x7b   : > { %1448 = vmatpush3.bf16.msra.mxu1 %v1447_v25  ;;  %1425 = vmatprep.subr.bf16.mxu0 %v1867_v0  ;;  %v360_v6 = vld [vmem:[#allocation7 + $0x28] sm:$0xff]  ;;  %v1468_v7 = vpack.c.bf16 %v534_v4, %v533_v3  ;;  %v536_v10 = vld [vmem:[#allocation7 + $0xb8] sm:$0xff]  ;;  %v361_v11 = vld [vmem:[#allocation7 + $0x30] sm:$0xff] }
  0x7c   : > { %1449 = vmatprep.subr.bf16.mxu1 %v1867_v0  ;;  %v1492_v8 = vpack.c.bf16 %v360_v6, %v359_v5  ;;  %v362_v12 = vld [vmem:[#allocation7 + $0x38] sm:$0xff]  ;;  %v1471_v13 = vpack.c.bf16 %v536_v10, %v535_v9  ;;  %v537_v15 = vld [vmem:[#allocation7 + $0xc0] sm:$0xff]  ;;  %v538_v16 = vld [vmem:[#allocation7 + $0xc8] sm:$0xff] }
  0x7d   : > { %v1495_v14 = vpack.c.bf16 %v362_v12, %v361_v11  ;;  %v363_v17 = vld [vmem:[#allocation7 + $0x40] sm:$0xff]  ;;  %v364_v18 = vld [vmem:[#allocation7 + $0x48] sm:$0xff]  ;;  %v1474_v19 = vpack.c.bf16 %v538_v16, %v537_v15  ;;  %v539_v21 = vld [vmem:[#allocation7 + $0xd0] sm:$0xff] }
  0x7e   : > { %1427 = vmatpush3.bf16.msra.mxu0 %v1426_v30  ;;  %v1498_v20 = vpack.c.bf16 %v364_v18, %v363_v17  ;;  %v540_v22 = vld [vmem:[#allocation7 + $0xd8] sm:$0xff]  ;;  %v365_v23 = vld [vmem:[#allocation7 + $0x50] sm:$0xff]  ;;  %v541_v27 = vld [vmem:[#allocation7 + $0xe0] sm:$0xff] }
  0x7f   : > { %1451 = vmatpush3.bf16.msra.mxu1 %v1450_v31  ;;  %1428 = vmatprep.subr.bf16.mxu0 %v1867_v0  ;;  %v366_v24 = vld [vmem:[#allocation7 + $0x58] sm:$0xff]  ;;  %v1477_v25 = vpack.c.bf16 %v540_v22, %v539_v21  ;;  %v542_v28 = vld [vmem:[#allocation7 + $0xe8] sm:$0xff]  ;;  %v367_v29 = vld [vmem:[#allocation7 + $0x60] sm:$0xff] }
  0x80   : > { %1452 = vmatprep.subr.bf16.mxu1 %v1867_v0  ;;  %v1501_v26 = vpack.c.bf16 %v366_v24, %v365_v23  ;;  %v368_v30 = vld [vmem:[#allocation7 + $0x68] sm:$0xff]  ;;  %v1480_v31 = vpack.c.bf16 %v542_v28, %v541_v27  ;;  %v543_v33 = vld [vmem:[#allocation7 + $0xf0] sm:$0xff]  ;;  %v544_v34 = vld [vmem:[#allocation7 + $0xf8] sm:$0xff] }
  0x81   : > { %v1504_v32 = vpack.c.bf16 %v368_v30, %v367_v29  ;;  %v369_v35 = vld [vmem:[#allocation7 + $0x70] sm:$0xff]  ;;  %v686_v39 = vld [vmem:[#allocation5 + $0x100] sm:$0xff]  ;;  %v687_v40 = vld [vmem:[#allocation5 + $0x108] sm:$0xff] }
  0x82   : > { %1430 = vmatpush3.bf16.msra.mxu0 %v1429_v36  ;;  %v370_v36 = vld [vmem:[#allocation7 + $0x78] sm:$0xff]  ;;  %v774_v41 = vld [vmem:[#allocation7 + $0x100] sm:$0xff]  ;;  %v688_v45 = vld [vmem:[#allocation5 + $0x110] sm:$0xff] }
  0x83   : > { %1454 = vmatpush3.bf16.msra.mxu1 %v1453_v37  ;;  %1431 = vmatprep.subr.bf16.mxu0 %v1867_v0  ;;  %v1483_v37 = vpack.c.bf16 %v544_v34, %v543_v33  ;;  %v1507_v38 = vpack.c.bf16 %v370_v36, %v369_v35  ;;  %v689_v46 = vld [vmem:[#allocation5 + $0x118] sm:$0xff]  ;;  %v776_v47 = vld [vmem:[#allocation7 + $0x110] sm:$0xff]  ;;  %v690_v52 = vld [vmem:[#allocation5 + $0x120] sm:$0xff] }
  0x84   : > { %1455 = vmatprep.subr.bf16.mxu1 %v1867_v0  ;;  %v691_v53 = vld [vmem:[#allocation5 + $0x128] sm:$0xff]  ;;  %v778_v54 = vld [vmem:[#allocation7 + $0x120] sm:$0xff]  ;;  %v693_v59 = vld [vmem:[#allocation5 + $0x138] sm:$0xff] }
  0x85   : > { %v780_v60 = vld [vmem:[#allocation7 + $0x130] sm:$0xff]  ;;  %v781_v61 = vld [vmem:[#allocation7 + $0x138] sm:$0xff]  ;;  %v782_v3 = vld [vmem:[#allocation7 + $0x140] sm:$0xff] }
  0x86   : > { %1433 = vmatpush3.bf16.msra.mxu0 %v1432_v42  ;;  %v775_v42 = vld [vmem:[#allocation7 + $0x108] sm:$0xff]  ;;  %v784_v9 = vld [vmem:[#allocation7 + $0x150] sm:$0xff]  ;;  %v785_v10 = vld [vmem:[#allocation7 + $0x158] sm:$0xff] }
  0x87   : > { %1457 = vmatpush3.bf16.msra.mxu1 %v1456_v43  ;;  %1434 = vmatprep.subr.bf16.mxu0 %v1867_v0  ;;  %v1510_v43 = vpack.c.bf16 %v687_v40, %v686_v39  ;;  %v1534_v44 = vpack.c.bf16 %v775_v42, %v774_v41  ;;  %v783_v4 = vld [vmem:[#allocation7 + $0x148] sm:$0xff]  ;;  %v1549_v12 = vpack.c.bf16 %v785_v10, %v784_v9  ;;  %v786_v15 = vld [vmem:[#allocation7 + $0x160] sm:$0xff]  ;;  %v788_v21 = vld [vmem:[#allocation7 + $0x170] sm:$0xff] }
  0x88   : > { %1458 = vmatprep.subr.bf16.mxu1 %v1867_v0  ;;  %v1546_v6 = vpack.c.bf16 %v783_v4, %v782_v3  ;;  %v787_v16 = vld [vmem:[#allocation7 + $0x168] sm:$0xff]  ;;  %v789_v22 = vld [vmem:[#allocation7 + $0x178] sm:$0xff] }
  0x89   : > { %v1552_v18 = vpack.c.bf16 %v787_v16, %v786_v15  ;;  %v1555_v24 = vpack.c.bf16 %v789_v22, %v788_v21 }
  0x8a   : > { %1436 = vmatpush3.bf16.msra.mxu0 %v1435_v48  ;;  %v777_v48 = vld [vmem:[#allocation7 + $0x118] sm:$0xff] }
  0x8b   : > { %1460 = vmatpush3.bf16.msra.mxu1 %v1459_v49  ;;  %1461 = vmatprep.subr.bf16.mxu0 %v1867_v0  ;;  %v1513_v49 = vpack.c.bf16 %v689_v46, %v688_v45  ;;  %v1537_v51 = vpack.c.bf16 %v777_v48, %v776_v47 }
  0x8c   : > { %1485 = vmatprep.subr.bf16.mxu1 %v1867_v0 }
  0x8d   : > { %1236 = vmatmul.mubr.f32.vlgmr.msra.gmra.mrb[0].mxu0 %v2124_v55 }
  0x8e   : > { %1271 = vmatmul.mubr.f32.vlgmr.msra.gmra.mrb[0].mxu1 %v335_v56  ;;  %1463 = vmatpush3.bf16.msra.mxu0 %v1462_v57  ;;  %v779_v57 = vld [vmem:[#allocation7 + $0x128] sm:$0xff] }
  0x8f   : > { %1487 = vmatpush3.bf16.msra.mxu1 %v1486_v58  ;;  %1464 = vmatprep.subr.bf16.mxu0 %v1867_v0  ;;  %v692_v58 = vld [vmem:[#allocation5 + $0x130] sm:$0xff] }
  0x90   : > { %1488 = vmatprep.subr.bf16.mxu1 %v1867_v0  ;;  %1305 = vmatprep.mubr.msk.f32.mxu0 %vm1868_vm1, %v1869_v1  ;;  %v1519_v62 = vpack.c.bf16 %v693_v59, %v692_v58 }
  0x91   : > { %1340 = vmatprep.mubr.msk.f32.mxu1 %vm1868_vm1, %v1869_v1 }
  0x92   : > { %1466 = vmatpush3.bf16.msra.mxu0 %v1465_v63  ;;  %v1543_v63 = vpack.c.bf16 %v781_v61, %v780_v60 }
  0x93   : > { %1490 = vmatpush3.bf16.msra.mxu1 %v1489_v2  ;;  %1467 = vmatprep.subr.bf16.mxu0 %v1867_v0  ;;  %v694_v2 = vld [vmem:[#allocation5 + $0x140] sm:$0xff] }
  0x94   : > { %1491 = vmatprep.subr.bf16.mxu1 %v1867_v0 }
  0x96   : > { %1469 = vmatpush3.bf16.msra.mxu0 %v1468_v7  ;;  %v696_v7 = vld [vmem:[#allocation5 + $0x150] sm:$0xff] }
  0x97   : > { %1493 = vmatpush3.bf16.msra.mxu1 %v1492_v8  ;;  %1470 = vmatprep.subr.bf16.mxu0 %v1867_v0  ;;  %v697_v8 = vld [vmem:[#allocation5 + $0x158] sm:$0xff] }
  0x98   : > { %1494 = vmatprep.subr.bf16.mxu1 %v1867_v0  ;;  %v1525_v11 = vpack.c.bf16 %v697_v8, %v696_v7 }
  0x9a   : > { %1472 = vmatpush3.bf16.msra.mxu0 %v1471_v13  ;;  %v698_v13 = vld [vmem:[#allocation5 + $0x160] sm:$0xff] }
  0x9b   : > { %1496 = vmatpush3.bf16.msra.mxu1 %v1495_v14  ;;  %1473 = vmatprep.subr.bf16.mxu0 %v1867_v0  ;;  %v699_v14 = vld [vmem:[#allocation5 + $0x168] sm:$0xff] }
  0x9c   : > { %1497 = vmatprep.subr.bf16.mxu1 %v1867_v0  ;;  %v1528_v17 = vpack.c.bf16 %v699_v14, %v698_v13 }
  0x9e   : > { %1475 = vmatpush3.bf16.msra.mxu0 %v1474_v19  ;;  %v700_v19 = vld [vmem:[#allocation5 + $0x170] sm:$0xff] }
  0x9f   : > { %1499 = vmatpush3.bf16.msra.mxu1 %v1498_v20  ;;  %1476 = vmatprep.subr.bf16.mxu0 %v1867_v0  ;;  %v701_v20 = vld [vmem:[#allocation5 + $0x178] sm:$0xff] }
  0xa0   : > { %1500 = vmatprep.subr.bf16.mxu1 %v1867_v0  ;;  %v1531_v23 = vpack.c.bf16 %v701_v20, %v700_v19 }
  0xa2   : > { %1478 = vmatpush3.bf16.msra.mxu0 %v1477_v25 }
  0xa3   : > { %1502 = vmatpush3.bf16.msra.mxu1 %v1501_v26  ;;  %1479 = vmatprep.subr.bf16.mxu0 %v1867_v0 }
  0xa4   : > { %1503 = vmatprep.subr.bf16.mxu1 %v1867_v0 }
  0xa6   : > { %1481 = vmatpush3.bf16.msra.mxu0 %v1480_v31 }
  0xa7   : > { %1505 = vmatpush3.bf16.msra.mxu1 %v1504_v32  ;;  %1482 = vmatprep.subr.bf16.mxu0 %v1867_v0 }
  0xa8   : > { %1506 = vmatprep.subr.bf16.mxu1 %v1867_v0 }
  0xaa   : > { %1484 = vmatpush3.bf16.msra.mxu0 %v1483_v37 }
  0xab   : > { %1508 = vmatpush3.bf16.msra.mxu1 %v1507_v38  ;;  %1509 = vmatprep.subr.bf16.mxu0 %v1867_v0 }
  0xac   : > { %1533 = vmatprep.subr.bf16.mxu1 %v1867_v0 }
  0xad   : > { %1306 = vmatmul.mubr.f32.vlgmr.msra.gmra.mrb[2].mxu0 %v2124_v55  ;;  %v1516_v55 = vpack.c.bf16 %v691_v53, %v690_v52 }
  0xae   : > { %1341 = vmatmul.mubr.f32.vlgmr.msra.gmra.mrb[2].mxu1 %v335_v56  ;;  %1511 = vmatpush3.bf16.msra.mxu0 %v1510_v43  ;;  %v1540_v56 = vpack.c.bf16 %v779_v57, %v778_v54  ;;  %v1870_v43 = vmov (!%p2306_p12), 0.0  }
  0xaf   : > { %1535 = vmatpush3.bf16.msra.mxu1 %v1534_v44  ;;  %1512 = vmatprep.subr.bf16.mxu0 %v1867_v0  ;;  %883 = vst [vmem:[#allocation11] sm:$0x3] (!%p2306_p12), %v1870_v43 }
  0xb0   : > { %1536 = vmatprep.subr.bf16.mxu1 %v1867_v0  ;;  %1375 = vmatprep.mubr.msk.f32.mxu0 %vm1868_vm1, %v1869_v1 }
  0xb1   : > { %1410 = vmatprep.mubr.msk.f32.mxu1 %vm1868_vm1, %v1869_v1  ;;  %v695_v1 = vld [vmem:[#allocation5 + $0x148] sm:$0xff] }
  0xb2   : > { %1514 = vmatpush3.bf16.msra.mxu0 %v1513_v49  ;;  %v1522_v5 = vpack.c.bf16 %v695_v1, %v694_v2 }
  0xb3   : > { %1538 = vmatpush3.bf16.msra.mxu1 %v1537_v51  ;;  %1515 = vmatprep.subr.bf16.mxu0 %v1867_v0 }
  0xb4   : > { %1539 = vmatprep.subr.bf16.mxu1 %v1867_v0 }
  0xb6   : > { %1517 = vmatpush3.bf16.msra.mxu0 %v1516_v55 }
  0xb7   : > { %1541 = vmatpush3.bf16.msra.mxu1 %v1540_v56  ;;  %1518 = vmatprep.subr.bf16.mxu0 %v1867_v0 }
  0xb8   : > { %1542 = vmatprep.subr.bf16.mxu1 %v1867_v0 }
  0xba   : > { %1520 = vmatpush3.bf16.msra.mxu0 %v1519_v62 }
  0xbb   : > { %1544 = vmatpush3.bf16.msra.mxu1 %v1543_v63  ;;  %1521 = vmatprep.subr.bf16.mxu0 %v1867_v0 }
  0xbc   : > { %1545 = vmatprep.subr.bf16.mxu1 %v1867_v0 }
  0xbe   : > { %1523 = vmatpush3.bf16.msra.mxu0 %v1522_v5 }
  0xbf   : > { %1547 = vmatpush3.bf16.msra.mxu1 %v1546_v6  ;;  %1524 = vmatprep.subr.bf16.mxu0 %v1867_v0 }
  0xc0   : > { %1548 = vmatprep.subr.bf16.mxu1 %v1867_v0 }
  0xc2   : > { %1526 = vmatpush3.bf16.msra.mxu0 %v1525_v11 }
  0xc3   : > { %1550 = vmatpush3.bf16.msra.mxu1 %v1549_v12  ;;  %1527 = vmatprep.subr.bf16.mxu0 %v1867_v0 }
  0xc4   : > { %1551 = vmatprep.subr.bf16.mxu1 %v1867_v0 }
  0xc6   : > { %1529 = vmatpush3.bf16.msra.mxu0 %v1528_v17 }
  0xc7   : > { %1553 = vmatpush3.bf16.msra.mxu1 %v1552_v18  ;;  %1530 = vmatprep.subr.bf16.mxu0 %v1867_v0 }
  0xc8   : > { %1554 = vmatprep.subr.bf16.mxu1 %v1867_v0  ;;  %v1089_v0 = vld [vmem:[%s2286_s2] ss:$0 sm:$0xff] }
  0xca   : > { %1532 = vmatpush3.bf16.msra.mxu0 %v1531_v23 }
  0xcb   : > { %1556 = vmatpush3.bf16.msra.mxu1 %v1555_v24 }
  0xcd   : > { %1376 = vmatmul.mubr.f32.vlgmr.msra.gmra.mrb[4].mxu0 %v2120_v50 }
  0xce   : > { %1411 = vmatmul.mubr.f32.vlgmr.msra.gmra.mrb[4].mxu1 %v2120_v50  ;;  %v1090_v50 = vld [vmem:[%s2288_s4] ss:$0 sm:$0xff] }
 0x160   : > { %v454_v25 = vpop.f32.mrb[0].mxu0 }
 0x161   : > { %v524_v26 = vpop.f32.mrb[0].mxu1  ;;  %v1237_v27 = vpop.f32.mrb[1].mxu0 }
 0x162   : > { %v525_v28 = vadd.f32 %v524_v26, %v454_v25  ;;  %v1272_v29 = vpop.f32.mrb[1].mxu1 }
 0x180   : > { %v611_v30 = vpop.f32.mrb[2].mxu0 }
 0x181   : > { %v681_v31 = vpop.f32.mrb[2].mxu1  ;;  %v1307_v32 = vpop.f32.mrb[3].mxu0 }
 0x182   : > { %v682_v33 = vadd.f32 %v681_v31, %v611_v30  ;;  %v1342_v34 = vpop.f32.mrb[3].mxu1 }
 0x1a0   : > { %v768_v35 = vpop.f32.mrb[4].mxu0  ;;  %882 = sbr.rel (%p2306_p12) target bundleno = 423 (0x1a7), region = 56 }
 0x1a1   : > { %v772_v36 = vadd.f32 %v768_v35, %v525_v28  ;;  %v856_v37 = vpop.f32.mrb[4].mxu1  ;;  %v1377_v38 = vpop.f32.mrb[5].mxu0 }
 0x1a2   : > { %v860_v39 = vadd.f32 %v856_v37, %v682_v33  ;;  %v1412_v40 = vpop.f32.mrb[5].mxu1 }
 0x1a3   : > { %v868_v41 = vadd.f32 %v1089_v0, %v772_v36 }
 0x1a4   : > { %v876_v42 = vadd.f32 %v1090_v50, %v860_v39 }
 0x1a5   : > { %877 = vst [vmem:[%s2182_s12] sm:$0xff] %v868_v41 }
 0x1a6   : > { %878 = vst [vmem:[%s329_s14] sm:$0xff] %v876_v42 }
 0x1a7 PF: > { %v885_v44 = vrot.slane %v868_v41, 4  ;;  %v891_v45 = vmul.f32 %v868_v41, %v868_v41  ;;  %s906_s21 = sand.u32 1, %s1935_s28   ;;  %s1094_s10 = sshll.u32 %s1935_s28, 7 }
 0x1a8   : > { %s2192_s20 = scalar_lea.hbm %s2290_s6, %s1094_s10  ;;  %s933_s30 = sshll.u32 %s329_s14, 4  ;;  %s2194_s30 = int_to_ptr.vmem [resolvable:$true] %s933_s30 }
 0x1a9   : > { %v886_v46 = vadd.f32 %v885_v44, %v868_v41  ;;  %v892_v47 = vrot.slane %v891_v45, 4  ;;  %s2199_s13 = scalar_lea.hbm %s2289_s5, %s1094_s10  ;;  %s907_s15 = scalar_lea.sflag [#allocation10], %s906_s21 }
 0x1aa   : > { %s1728_s29 = scalar_lea.vmem %s2194_s30, 128  ;;  %p2307_p1 = scmp.ne.s32.totalorder %s2301_s18, 0 }
 0x1ab   : > { %v887_v48 = vrot.slane %v886_v46, 2  ;;  %v893_v49 = vadd.f32 %v892_v47, %v891_v45  ;;  %p1729_p3 = scmp.ne.s32.totalorder %s2194_s30, %s1728_s29  ;;  %s1871_s23 = smov [#allocation9]  }
 0x1ac   : > { %s1732_s14 = sshll.u32 %s1871_s23, 4  ;;  %s1733_s14 = int_to_ptr.vmem [resolvable:$false] %s1732_s14 }
 0x1ad   : > { %p1730_p11 = pnand %p1729_p3, %p2307_p1  ;;  %s1734_s11 = scalar_lea.vmem %s1733_s14, 256 }
 0x1ae   : > { %p1735_p10 = scmp.lt.s32.totalorder %s2194_s30, %s1733_s14  ;;  %p1736_p13 = scmp.lt.s32.totalorder %s1734_s11, %s1728_s29 }
 0x1af   : > { %p1731_p7 = pneg %p1730_p11 }
 0x1b0   : > { %p1737_p2 = por %p1736_p13, %p1735_p10 }
 0x1b2   : > { %p1738_p0 = pnand %p1737_p2, %p1731_p7 }
 0x1b4   : > { %1741 = shalt.err (!%p1738_p0)
}
 0x1b5   : > { %s1742_s21 = scalar_lea.hbm %s2192_s20, 128  ;;  %s1746_s22 = scalar_lea.hbm %s2290_s6, 256 }
 0x1b6   : > { %p1743_p6 = scmp.ne.s32.totalorder %s2192_s20, %s1742_s21  ;;  %p1747_p5 = scmp.lt.u32.totalorder %s2192_s20, %s2290_s6 }
 0x1b7   : > { %p1748_p9 = scmp.lt.u32.totalorder %s1746_s22, %s1742_s21  ;;  %p1750_p3 = scmp.lt.u32.totalorder %s1742_s21, %s2192_s20 }
 0x1b8   : > { %p1744_p8 = pnand %p1743_p6, %p2307_p1 }
 0x1b9   : > { %p1749_p12 = por %p1748_p9, %p1747_p5 }
 0x1ba   : > { %p1745_p4 = pneg %p1744_p8 }
 0x1bb   : > { %p1751_p11 = por %p1750_p3, %p1749_p12 }
 0x1bd   : > { %p1752_p7 = pnand %p1751_p11, %p1745_p4 }
 0x1bf   : > { %1755 = shalt.err (!%p1752_p7)
}
 0x1c0   : > { %1568 = dma.vmem_to_hbm [thread:$0]  (%p2307_p1), %s2194_s30, 128, %s2192_s20, %s907_s15   ;;  %v888_v51 = vadd.f32 %v887_v48, %v886_v46  ;;  %v894_v52 = vrot.slane %v893_v49, 2 }
 0x1c1   : > { %s920_s29 = sshll.u32 %s2182_s12, 4  ;;  %s902_s11 = scalar_lea.sflag [#allocation4], %s2086_s17  ;;  %s921_s29 = int_to_ptr.vmem [resolvable:$true] %s920_s29 }
 0x1c2   : > { %s1756_s10 = scalar_lea.vmem %s921_s29, 128  ;;  %s1872_s21 = smov [#allocation8]  }
 0x1c3   : > { %p1757_p10 = scmp.ne.s32.totalorder %s921_s29, %s1756_s10  ;;  %s1760_s9 = sshll.u32 %s1872_s21, 4  ;;  %s1761_s9 = int_to_ptr.vmem [resolvable:$false] %s1760_s9 }
 0x1c4   : > { %s1762_s22 = scalar_lea.vmem %s1761_s9, 256  ;;  %p1763_p0 = scmp.lt.s32.totalorder %s921_s29, %s1761_s9 }
 0x1c5   : > { %p1758_p13 = pnand %p1757_p10, %p2307_p1  ;;  %p1764_p6 = scmp.lt.s32.totalorder %s1762_s22, %s1756_s10 }
 0x1c7   : > { %p1759_p2 = pneg %p1758_p13  ;;  %p1765_p8 = por %p1764_p6, %p1763_p0 }
 0x1c9   : > { %p1766_p4 = pnand %p1765_p8, %p1759_p2 }
 0x1cb   : > { %1769 = shalt.err (!%p1766_p4)
}
 0x1cc   : > { %s1770_s17 = scalar_lea.hbm %s2199_s13, 128  ;;  %s1774_s30 = scalar_lea.hbm %s2289_s5, 256 }
 0x1cd   : > { %p1771_p5 = scmp.ne.s32.totalorder %s2199_s13, %s1770_s17  ;;  %p1775_p3 = scmp.lt.u32.totalorder %s2199_s13, %s2289_s5 }
 0x1ce   : > { %p1776_p11 = scmp.lt.u32.totalorder %s1774_s30, %s1770_s17  ;;  %p1778_p10 = scmp.lt.u32.totalorder %s1770_s17, %s2199_s13 }
 0x1cf   : > { %p1772_p9 = pnand %p1771_p5, %p2307_p1 }
 0x1d0   : > { %p1777_p7 = por %p1776_p11, %p1775_p3 }
 0x1d1   : > { %p1773_p12 = pneg %p1772_p9 }
 0x1d2   : > { %p1779_p13 = por %p1778_p10, %p1777_p7 }
 0x1d4   : > { %p1780_p2 = pnand %p1779_p13, %p1773_p12 }
 0x1d6   : > { %1783 = shalt.err (!%p1780_p2)
}
 0x1d7   : > { %1567 = dma.vmem_to_hbm [thread:$0]  (%p2307_p1), %s921_s29, 128, %s2199_s13, %s902_s11   ;;  %v889_v53 = vrot.slane %v888_v51, 1  ;;  %v895_v54 = vadd.f32 %v894_v52, %v893_v49  ;;  %v884_v56 = vld [vmem:[#allocation11] sm:$0x3] }
 0x1d8   : > { %s1873_s14 = smov [#allocation11]   ;;  %p2308_p6 = scmp.eq.s32.totalorder %s1935_s28, 1 }
 0x1d9   : > { %v890_v57 = vadd.f32 %v889_v53, %v888_v51  ;;  %v896_v55 = vrot.slane %v895_v54, 1  ;;  %s944_s10 = sshll.u32 %s1873_s14, 4  ;;  %s945_s10 = int_to_ptr.vmem [resolvable:$true] %s944_s10 }
 0x1da   : > { %s1784_s21 = scalar_lea.vmem %s945_s10, 32  ;;  %p1791_p5 = scmp.lt.s32.totalorder %s945_s10, %s945_s10 }
 0x1db   : > { %v897_v58 = vadd.f32 %v896_v55, %v895_v54  ;;  %p1785_p0 = scmp.ne.s32.totalorder %s945_s10, %s1784_s21  ;;  %p1792_p1 = scmp.lt.s32.totalorder %s1784_s21, %s1784_s21 }
 0x1dd   : > { %v898_v59 = vsel %vm337_vm0, %v890_v57, %v897_v58  ;;  %p1786_p8 = pnand %p1785_p0, %p2308_p6  ;;  %p1793_p9 = por %p1792_p1, %p1791_p5 }
 0x1de   : > { %v899_v60 = vadd.f32 %v898_v59, %v884_v56 }
 0x1df   : > { %p1787_p4 = pneg %p1786_p8 }
 0x1e0   : > { %900 = vst [vmem:[#allocation11] sm:$0x3] %v899_v60 }
 0x1e1   : > { %p1794_p12 = pnand %p1793_p9, %p1787_p4 }
 0x1e3   : > { %1797 = shalt.err (!%p1794_p12)
}
 0x1e4   : > { %s1798_s29 = scalar_lea.hbm %s2291_s7, 32  ;;  %p2309_p11 = pmov %p2308_p6 }
 0x1e5   : > { %p1799_p3 = scmp.ne.s32.totalorder %s2291_s7, %s1798_s29  ;;  %p1804_p13 = scmp.lt.u32.totalorder %s1798_s29, %s2291_s7 }
 0x1e7   : > { %p1800_p7 = pnand %p1799_p3, %p2309_p11 }
 0x1e9   : > { %p1801_p10 = pneg %p1800_p7 }
 0x1eb   : > { %p1806_p2 = pnand %p1804_p13, %p1801_p10 }
 0x1ed   : > { %1809 = shalt.err (!%p1806_p2)
}
 0x1ee   : > { %p2310_p0 = pmov %p2308_p6 }
 0x1f0   : > { %1570 = dma.vmem_to_hbm [thread:$0]  (%p2310_p0), %s945_s10, 32, %s2291_s7, [#allocation10]  }
 0x1f1   : > { %p2311_p6 = pmov %p2310_p0 }
 0x1f2   : > { %p2312_p8 = pmov %p2310_p0 }
 0x1f3   : > { %1835 = dma.done.wait (%p2311_p6), [#allocation10], 32  }
 0x1f4   : > { %1837 = vsyncadd (%p2312_p8), [#allocation10], 4294967264 }
 0x1f5 PF: > { %s960_s30 = sand.u32 1, %s1848_s24   ;;  %p2313_p4 = scmp.ne.s32.totalorder %s2297_s8, 0 }
 0x1f6   : > { %p2314_p5 = scmp.ge.s32.totalorder %s1860_s27, 2  ;;  %s961_s15 = scalar_lea.sflag [#allocation4], %s960_s30 }
 0x1f8   : > { %p1587_p1 = pnand %p2314_p5, %p2313_p4 }
 0x1fa   : > { %1839 = dma.done.wait (!%p1587_p1), %s961_s15, 128  }
 0x1fb   : > { %1841 = vsyncadd (!%p1587_p1), %s961_s15, 4294967168  ;;  %s2315_s23 = sadd.s32 4294967294, %s1860_s27  }
 0x1fc   : > { %s969_s14 = sand.u32 1, %s2315_s23  }
 0x1fd   : > { %s970_s10 = scalar_lea.sflag [#allocation10], %s969_s14 }
 0x1fe   : > { %1843 = dma.done.wait (!%p1587_p1), %s970_s10, 128  }
 0x1ff   : > { %1845 = vsyncadd (!%p1587_p1), %s970_s10, 4294967168  ;;  %p25_p9 = scmp.ge.s32.totalorder %s2027_s16, 4   ;;  %s2316_s24 = smov %s1852_s25 }
 0x200   : > { %s2317_s25 = smov %s1856_s26  ;;  %s2318_s26 = smov %s2043_s19 }
 0x201   : > { %s2319_s27 = smov %s2027_s16  ;;  %27 = sbr.rel (!%p25_p9) target bundleno = 8 (0x8), region = 126 }
 0x208   :  { %975 = vsyncpa [#allocation3], 1 }
 0x209   :  { %977 = vsyncpa [#allocation3 + $0x1], 1 }
 0x20a   :  { %978 = vsyncpa [#allocation6], 1 }
 0x20b   :  { %979 = vsyncpa [#allocation4], 1 }
 0x20c   :  { %981 = vsyncpa [#allocation4 + $0x1], 1 }
 0x20d   :  { %982 = vsyncpa [#allocation10], 1 }
 0x20e   :  { %984 = vsyncpa [#allocation10 + $0x1], 1 }

</bundles_post_ra>
